<compile_context>
chip_gen: v7x
topology: tpu7x:2x2x1
jax: 0.10.0
libtpu: 0.0.40
codegen_flags: <defaults>
</compile_context>

<pallas_src>
import math

import jax
import jax.numpy as jnp
from jax.experimental import pallas as pl
from jax.experimental.pallas import tpu as pltpu

_SMOOTH = 1e-6
_TARGET_BLOCK_BYTES = 2 * 1024 * 1024   # ~2 MiB/input block -> ~85% HBM roofline
_MAX_ROW_TILE = 1024
_LANE = 128


def _round_up(x, m):
    return ((x + m - 1) // m) * m


def _round_down(x, m):
    return (x // m) * m


def _choose_tiles(rows, spatial, sub, itemsize):
    """Pick (row_tile, s_tile) so one input block is ~_TARGET_BLOCK_BYTES."""
    row_bytes = spatial * itemsize
    if row_bytes * sub <= _TARGET_BLOCK_BYTES:
        # Full spatial extent per block; grow the row tile to hit the target.
        s_tile = spatial
        row_tile = min(
            _MAX_ROW_TILE,
            max(sub, _round_down(_TARGET_BLOCK_BYTES // row_bytes, sub)),
        )
    else:
        # Large images: minimum row tile, tile spatial in 128-lane multiples.
        row_tile = sub
        s_tile = max(
            _LANE,
            _round_down(_TARGET_BLOCK_BYTES // (row_tile * itemsize), _LANE),
        )
        s_tile = min(s_tile, _round_up(spatial, _LANE))
    # No point making the row tile larger than the (rounded-up) row count.
    row_tile = min(row_tile, _round_up(rows, sub))
    return row_tile, s_tile


def _make_dice_kernel(spatial, s_tile):
    ragged_spatial = (spatial % s_tile) != 0

    def kernel(x_ref, t_ref, o_ref, num_acc, den_acc):
        k = pl.program_id(1)

        @pl.when(k == 0)
        def _():
            num_acc[...] = jnp.zeros_like(num_acc)
            den_acc[...] = jnp.zeros_like(den_acc)

        x = x_ref[...].astype(jnp.float32)
        t = t_ref[...].astype(jnp.float32)
        if ragged_spatial:
            # Last spatial block hangs past the array edge: zero the OOB lanes
            # so stale/garbage data cannot contaminate the reductions.
            col = jax.lax.broadcasted_iota(jnp.int32, x.shape, 1) + k * s_tile
            valid = col < spatial
            x = jnp.where(valid, x, 0.0)
            t = jnp.where(valid, t, 0.0)

        num_acc[...] += jnp.sum(x * t, axis=-1, keepdims=True)
        den_acc[...] += jnp.sum(x * x + t * t, axis=-1, keepdims=True)

        @pl.when(k == pl.num_programs(1) - 1)
        def _():
            # NOTE: rows past B*C (ragged last row block) compute garbage here;
            # they are sliced off in the wrapper.
            o_ref[...] = (2.0 * num_acc[...] + _SMOOTH) / (den_acc[...] + _SMOOTH)

    return kernel


def binary_dice_loss_xent(inputs, target):
    """Pallas implementation of BinaryDiceLoss_xent.forward (3D/4D/5D inputs)."""
    assert inputs.shape[2:] == target.shape[2:], "predict & target shape do not match"
    assert inputs.shape == target.shape, "kernel assumes identical shapes (no broadcast)"
    assert inputs.ndim >= 3

    B, C = inputs.shape[:2]
    rows = B * C
    spatial = math.prod(inputs.shape[2:])

    x2 = inputs.reshape(rows, spatial)
    t2 = target.reshape(rows, spatial)

    it_in = jnp.dtype(inputs.dtype).itemsize
    it_tg = jnp.dtype(target.dtype).itemsize
    sub = {8: 8, 4: 8, 2: 16, 1: 32}[min(it_in, it_tg)]   # sublane multiple
    itemsize = max(it_in, it_tg)

    row_tile, s_tile = _choose_tiles(rows, spatial, sub, itemsize)
    grid = (pl.cdiv(rows, row_tile), pl.cdiv(spatial, s_tile))

    out = pl.pallas_call(
        _make_dice_kernel(spatial, s_tile),
        out_shape=jax.ShapeDtypeStruct((rows, 1), jnp.float32),
        grid_spec=pltpu.PrefetchScalarGridSpec(
            num_scalar_prefetch=0,
            grid=grid,
            in_specs=[
                pl.BlockSpec((row_tile, s_tile), lambda i, k: (i, k)),
                pl.BlockSpec((row_tile, s_tile), lambda i, k: (i, k)),
            ],
            out_specs=pl.BlockSpec((row_tile, 1), lambda i, k: (i, 0)),
            scratch_shapes=[
                pltpu.VMEM((row_tile, 1), jnp.float32),  # intersect accumulator
                pltpu.VMEM((row_tile, 1), jnp.float32),  # z_sum + y_sum accumulator
            ],
        ),
        compiler_params=pltpu.CompilerParams(
            dimension_semantics=("parallel", "arbitrary"),
            vmem_limit_bytes=48 * 1024 * 1024,
        ),
    )(x2, t2)

    return out[:, 0].reshape(B, C)


def _reference(inputs, target):
    # Pure-JAX reference matching the PyTorch module exactly.
    smooth = 1e-6
    axes = tuple(range(2, inputs.ndim))
    x = inputs.astype(jnp.float32)
    t = target.astype(jnp.float32)
    intersect = jnp.sum(x * t, axis=axes)
    y_sum = jnp.sum(t * t, axis=axes)
    z_sum = jnp.sum(x * x, axis=axes)
    return (2 * intersect + smooth) / (z_sum + y_sum + smooth)


if __name__ == "__main__":
    key = jax.random.PRNGKey(0)
    k1, k2, k3, k4 = jax.random.split(key, 4)

    # Case 1: the canonical small NCHW shape.
    B, C, H, W = 2, 4, 16, 16
    inputs = jax.nn.sigmoid(jax.random.normal(k1, (B, C, H, W), dtype=jnp.float32))
    target = (jax.random.uniform(k2, (B, C, H, W)) > 0.5).astype(jnp.float32)
    out = jax.block_until_ready(binary_dice_loss_xent(inputs, target))
    ref = _reference(inputs, target)
    assert out.shape == (B, C)
    assert jnp.allclose(out, ref, rtol=1e-5, atol=1e-6), (out, ref)

    # Case 2: ragged row count (B*C=9 not a multiple of 8) and a spatial size
    # that is not a multiple of 128 -- exercises the no-pad ragged-block path.
    B2, C2, H2, W2 = 3, 3, 20, 20
    inputs2 = jax.nn.sigmoid(jax.random.normal(k3, (B2, C2, H2, W2), dtype=jnp.float32))
    target2 = (jax.random.uniform(k4, (B2, C2, H2, W2)) > 0.5).astype(jnp.float32)
    out2 = jax.block_until_ready(binary_dice_loss_xent(inputs2, target2))
    ref2 = _reference(inputs2, target2)
    assert out2.shape == (B2, C2)
    assert jnp.allclose(out2, ref2, rtol=1e-5, atol=1e-6), (out2, ref2)

    print("KERNEL_OK")
</pallas_src>

<mosaic_0001>
module attributes {stable_mosaic.version = 11 : i64} {
  func.func @kernel(%arg0: i32, %arg1: i32, %arg2: memref<8x256xf32, #tpu.memory_space<vmem>>, %arg3: memref<8x256xf32, #tpu.memory_space<vmem>>, %arg4: memref<8x1xf32, #tpu.memory_space<vmem>>, %arg5: memref<8x1xf32, #tpu.memory_space<vmem>>, %arg6: memref<8x1xf32, #tpu.memory_space<vmem>>) attributes {dimension_semantics = [#tpu.dimension_semantics<parallel>, #tpu.dimension_semantics<arbitrary>], iteration_bounds = array<i64: 1, 1>, scalar_prefetch = 0 : i64, scratch_operands = 2 : i64, tpu.core_type = #tpu.core_type<tc>, window_params = [{transform_indices = @transform_0, window_bounds = array<i64: 8, 256>}, {transform_indices = @transform_1, window_bounds = array<i64: 8, 256>}, {transform_indices = @transform_2, window_bounds = array<i64: 8, 1>}]} {
    %c0_i32 = arith.constant 0 : i32
    %0 = arith.cmpi eq, %arg1, %c0_i32 : i32
    %1 = arith.extui %0 : i1 to i32
    %c0_i32_0 = arith.constant 0 : i32
    %2 = arith.cmpi ne, %1, %c0_i32_0 : i32
    scf.if %2 {
      %cst_15 = arith.constant 0.000000e+00 : f32
      %22 = vector.broadcast %cst_15 : f32 to vector<8x1xf32>
      %c0_16 = arith.constant 0 : index
      %c0_17 = arith.constant 0 : index
      %23 = vector.load %arg5[%c0_16, %c0_17] : memref<8x1xf32, #tpu.memory_space<vmem>>, vector<8x1xf32>
      tpu.vector_store %arg5[%c0_16, %c0_17], %22 {strides = array<i32>} : memref<8x1xf32, #tpu.memory_space<vmem>>, vector<8x1xf32>,
      %cst_18 = arith.constant 0.000000e+00 : f32
      %24 = vector.broadcast %cst_18 : f32 to vector<8x1xf32>
      %c0_19 = arith.constant 0 : index
      %c0_20 = arith.constant 0 : index
      %25 = vector.load %arg6[%c0_19, %c0_20] : memref<8x1xf32, #tpu.memory_space<vmem>>, vector<8x1xf32>
      tpu.vector_store %arg6[%c0_19, %c0_20], %24 {strides = array<i32>} : memref<8x1xf32, #tpu.memory_space<vmem>>, vector<8x1xf32>,
    } else {
    }
    %c0 = arith.constant 0 : index
    %c0_1 = arith.constant 0 : index
    %3 = vector.load %arg2[%c0, %c0_1] : memref<8x256xf32, #tpu.memory_space<vmem>>, vector<8x256xf32>
    %c0_2 = arith.constant 0 : index
    %c0_3 = arith.constant 0 : index
    %4 = vector.load %arg3[%c0_2, %c0_3] : memref<8x256xf32, #tpu.memory_space<vmem>>, vector<8x256xf32>
    %c0_4 = arith.constant 0 : index
    %c0_5 = arith.constant 0 : index
    %5 = vector.load %arg5[%c0_4, %c0_5] : memref<8x1xf32, #tpu.memory_space<vmem>>, vector<8x1xf32>
    %6 = arith.mulf %3, %4 : vector<8x256xf32>
    %cst = arith.constant dense<0.000000e+00> : vector<8xf32>
    %7 = vector.multi_reduction <add>, %6, %cst [1] : vector<8x256xf32> to vector<8xf32>
    %8 = vector.shape_cast %7 : vector<8xf32> to vector<8x1xf32>
    %9 = arith.addf %5, %8 : vector<8x1xf32>
    %c0_6 = arith.constant 0 : index
    %c0_7 = arith.constant 0 : index
    %10 = vector.load %arg5[%c0_6, %c0_7] : memref<8x1xf32, #tpu.memory_space<vmem>>, vector<8x1xf32>
    tpu.vector_store %arg5[%c0_6, %c0_7], %9 {strides = array<i32>} : memref<8x1xf32, #tpu.memory_space<vmem>>, vector<8x1xf32>,
    %c0_8 = arith.constant 0 : index
    %c0_9 = arith.constant 0 : index
    %11 = vector.load %arg6[%c0_8, %c0_9] : memref<8x1xf32, #tpu.memory_space<vmem>>, vector<8x1xf32>
    %12 = arith.mulf %3, %3 : vector<8x256xf32>
    %13 = arith.mulf %4, %4 : vector<8x256xf32>
    %14 = arith.addf %12, %13 : vector<8x256xf32>
    %cst_10 = arith.constant dense<0.000000e+00> : vector<8xf32>
    %15 = vector.multi_reduction <add>, %14, %cst_10 [1] : vector<8x256xf32> to vector<8xf32>
    %16 = vector.shape_cast %15 : vector<8xf32> to vector<8x1xf32>
    %17 = arith.addf %11, %16 : vector<8x1xf32>
    %c0_11 = arith.constant 0 : index
    %c0_12 = arith.constant 0 : index
    %18 = vector.load %arg6[%c0_11, %c0_12] : memref<8x1xf32, #tpu.memory_space<vmem>>, vector<8x1xf32>
    tpu.vector_store %arg6[%c0_11, %c0_12], %17 {strides = array<i32>} : memref<8x1xf32, #tpu.memory_space<vmem>>, vector<8x1xf32>,
    %c0_i32_13 = arith.constant 0 : i32
    %19 = arith.cmpi eq, %arg1, %c0_i32_13 : i32
    %20 = arith.extui %19 : i1 to i32
    %c0_i32_14 = arith.constant 0 : i32
    %21 = arith.cmpi ne, %20, %c0_i32_14 : i32
    scf.if %21 {
      %c0_15 = arith.constant 0 : index
      %c0_16 = arith.constant 0 : index
      %22 = vector.load %arg5[%c0_15, %c0_16] : memref<8x1xf32, #tpu.memory_space<vmem>>, vector<8x1xf32>
      %cst_17 = arith.constant 2.000000e+00 : f32
      %23 = vector.broadcast %cst_17 : f32 to vector<8x1xf32>
      %24 = arith.mulf %23, %22 : vector<8x1xf32>
      %cst_18 = arith.constant 9.99999997E-7 : f32
      %25 = vector.broadcast %cst_18 : f32 to vector<8x1xf32>
      %26 = arith.addf %24, %25 : vector<8x1xf32>
      %c0_19 = arith.constant 0 : index
      %c0_20 = arith.constant 0 : index
      %27 = vector.load %arg6[%c0_19, %c0_20] : memref<8x1xf32, #tpu.memory_space<vmem>>, vector<8x1xf32>
      %cst_21 = arith.constant 9.99999997E-7 : f32
      %28 = vector.broadcast %cst_21 : f32 to vector<8x1xf32>
      %29 = arith.addf %27, %28 : vector<8x1xf32>
      %30 = arith.divf %26, %29 : vector<8x1xf32>
      %c0_22 = arith.constant 0 : index
      %c0_23 = arith.constant 0 : index
      %31 = vector.load %arg4[%c0_22, %c0_23] : memref<8x1xf32, #tpu.memory_space<vmem>>, vector<8x1xf32>
      tpu.vector_store %arg4[%c0_22, %c0_23], %30 {strides = array<i32>} : memref<8x1xf32, #tpu.memory_space<vmem>>, vector<8x1xf32>,
    } else {
    }
    return
  }
  func.func @transform_0(%arg0: i32, %arg1: i32) -> (i32, i32) {
    %c0_i32 = arith.constant 0 : i32
    return %arg0, %arg1 : i32, i32
  }
  func.func @transform_1(%arg0: i32, %arg1: i32) -> (i32, i32) {
    %c0_i32 = arith.constant 0 : i32
    return %arg0, %arg1 : i32, i32
  }
  func.func @transform_2(%arg0: i32, %arg1: i32) -> (i32, i32) {
    %c0_i32 = arith.constant 0 : i32
    %c0_i32_0 = arith.constant 0 : i32
    return %arg0, %c0_i32 : i32, i32
  }
}

</mosaic_0001>

<bundles_post_ra>
// kernel: tpu_custom_call.1
= control target key start
LH: loop header
LB: loop body
LE: loop exit
PB: predicated region body
PF: predicated region fallthrough
CT: control target
= control target key end

     0   :  { %7 = vsyncpa [#allocation5], 0  ;;  %s187_s0 = inlined_call_operand.hbm [shape: f32[8,256], index: 0, kind: input, shape index: {}]   ;;  %s188_s1 = inlined_call_operand.hbm [shape: f32[8,256], index: 1, kind: input, shape index: {}]   ;;  %s189_s2 = inlined_call_operand.vmem [shape: f32[8,1], index: 2, kind: output, shape index: {}]  }
   0x1   :  { %8 = vsyncpa [#allocation7], 0  ;;  %s137_s9 = smov [#allocation4]   ;;  %s138_s11 = smov [#allocation6]  }
   0x2   :  { %s15_s10 = sshll.u32 %s137_s9, 4  ;;  %s25_s12 = sshll.u32 %s138_s11, 4  ;;  %s16_s10 = int_to_ptr.vmem [resolvable:$true] %s15_s10  ;;  %s26_s12 = int_to_ptr.vmem [resolvable:$true] %s25_s12 }
   0x3   :  { %s89_s15 = scalar_lea.hbm %s187_s0, 256 }
   0x4   :  { %p90_p0 = scmp.ne.s32.totalorder %s187_s0, %s89_s15  ;;  %p93_p1 = scmp.lt.u32.totalorder %s89_s15, %s187_s0 }
   0x6   :  { %p95_p2 = pnand %p93_p1, %p90_p0 }
   0x8   :  { %98 = shalt.err (!%p95_p2)
}
   0x9   :  { %s99_s20 = scalar_lea.vmem %s16_s10, 256  ;;  %p104_p4 = scmp.lt.s32.totalorder %s16_s10, %s16_s10 }
   0xa   :  { %p100_p3 = scmp.ne.s32.totalorder %s16_s10, %s99_s20  ;;  %p105_p5 = scmp.lt.s32.totalorder %s99_s20, %s99_s20 }
   0xc   :  { %p106_p6 = por %p105_p5, %p104_p4 }
   0xe   :  { %p107_p7 = pnand %p106_p6, %p100_p3 }
  0x10   :  { %110 = shalt.err (!%p107_p7)
}
  0x11   :  { %18 = dma.hbm_to_vmem [thread:$0]  %s187_s0, 256, %s16_s10, [#allocation5]  }
  0x12   :  { %s111_s25 = scalar_lea.hbm %s188_s1, 256 }
  0x13   :  { %p112_p8 = scmp.ne.s32.totalorder %s188_s1, %s111_s25  ;;  %p115_p9 = scmp.lt.u32.totalorder %s111_s25, %s188_s1 }
  0x15   :  { %p117_p10 = pnand %p115_p9, %p112_p8 }
  0x17   :  { %120 = shalt.err (!%p117_p10)
}
  0x18   :  { %s121_s30 = scalar_lea.vmem %s26_s12, 256  ;;  %p126_p12 = scmp.lt.s32.totalorder %s26_s12, %s26_s12 }
  0x19   :  { %p122_p11 = scmp.ne.s32.totalorder %s26_s12, %s121_s30  ;;  %p127_p13 = scmp.lt.s32.totalorder %s121_s30, %s121_s30 }
  0x1b   :  { %p128_p0 = por %p127_p13, %p126_p12 }
  0x1d   :  { %p129_p1 = pnand %p128_p0, %p122_p11 }
  0x1f   :  { %132 = shalt.err (!%p129_p1)
}
  0x20   :  { %28 = dma.hbm_to_vmem [thread:$0]  %s188_s1, 256, %s26_s12, [#allocation7]  }
  0x21   :  { %133 = dma.done.wait [#allocation5], 256  }
  0x22   :  { %134 = vsyncadd [#allocation5], 4294967040 }
  0x23   :  { %135 = dma.done.wait [#allocation7], 256  }
  0x24   :  { %136 = vsyncadd [#allocation7], 4294967040  ;;  %vm39_vm0 = vcmask 7168   ;;  %v139_v0 = vmov 0.0   ;;  %v42_v1 = vld [vmem:[#allocation4] sm:$0xff]  ;;  %v43_v2 = vld [vmem:[#allocation4 + $0x8] sm:$0xff] }
  0x25   :  { %41 = vst.msk [vmem:[#allocation3] sm:$0xff] %vm39_vm0, %v139_v0  ;;  %40 = vst.msk [vmem:[#allocation2] sm:$0xff] %vm39_vm0, %v139_v0  ;;  %v44_v3 = vld [vmem:[#allocation6] sm:$0xff]  ;;  %v45_v4 = vld [vmem:[#allocation6 + $0x8] sm:$0xff]  ;;  %v56_v5 = vmul.f32 %v42_v1, %v42_v1  ;;  %v57_v6 = vmul.f32 %v43_v2, %v43_v2 }
  0x26   :  { %v58_v7 = vmul.f32 %v44_v3, %v44_v3  ;;  %v59_v8 = vmul.f32 %v45_v4, %v45_v4  ;;  %v47_v11 = vmul.f32 %v44_v3, %v42_v1  ;;  %v48_v12 = vmul.f32 %v45_v4, %v43_v2 }
  0x28   :  { %v60_v9 = vadd.f32 %v58_v7, %v56_v5  ;;  %v61_v10 = vadd.f32 %v59_v8, %v57_v6  ;;  %v49_v14 = vadd.f32 %v48_v12, %v47_v11 }
  0x2a   :  { %v62_v13 = vadd.f32 %v61_v10, %v60_v9 }
  0x2c   :  { %63 = vadd.xlane.f32.xlu0 %v62_v13  ;;  %v55_v15 = vld [vmem:[#allocation3] sm:$0xff]  ;;  %v46_v18 = vld [vmem:[#allocation2] sm:$0xff] }
  0x30   :  { %50 = vadd.xlane.f32.xlu0 %v49_v14 }
  0xb9   :  { %v64_v16 = vpop.xlane.xlu0 %63 }
  0xba   :  { %v65_v17 = vadd.f32 %v64_v16, %v55_v15 }
  0xbc   :  { %66 = vst.msk [vmem:[#allocation3] sm:$0xff] %vm39_vm0, %v65_v17 }
  0xbd   :  { %v51_v19 = vpop.xlane.xlu0 %50 }
  0xbe   :  { %v52_v20 = vadd.f32 %v51_v19, %v46_v18 }
  0xc0   :  { %54 = vst.msk [vmem:[#allocation2] sm:$0xff] %vm39_vm0, %v52_v20 }
  0xc3   :  { %v73_v21 = vld [vmem:[#allocation3] sm:$0xff] }
  0xc4   :  { %v74_v22 = vadd.f32 1e-06, %v73_v21 }
  0xc6   :  { %87 = vrcp.f32 %v74_v22 }
  0xc7   :  { %v70_v23 = vld [vmem:[#allocation2] sm:$0xff] }
  0xc8   :  { %v71_v24 = vmul.f32 2.0, %v70_v23 }
  0xca   :  { %v72_v25 = vadd.f32 1e-06, %v71_v24 }
  0xd0   :  { %v88_v26 = vpop.eup %87 }
  0xd1   :  { %v76_v27 = vmul.f32 %v88_v26, %v72_v25 }
  0xd3   :  { %77 = vst.msk [vmem:[%s189_s2] sm:$0xff] %vm39_vm0, %v76_v27 }
  0xd4   :  { %82 = vsyncpa [#allocation5], 1 }
  0xd5   :  { %83 = vsyncpa [#allocation7], 1 }

</bundles_post_ra>
